<compile_context>
chip_gen: v6e
topology: v6e:2x2x1
jax: 0.10.0
libtpu: 0.0.40
codegen_flags: <defaults>
</compile_context>

<pallas_src>
import functools
import math

import jax
import jax.numpy as jnp
from jax import lax
from jax.experimental import pallas as pl
from jax.experimental.pallas import tpu as pltpu


# ----------------------------- pass 1: fused global max + avg pool -----------------------------

def _pool_kernel(inv_s, s_total, ts, acc_lanes, x_ref, max_ref, avg_ref, mx_acc, sum_acc):
    """Rows = (b, c) on sublanes, spatial on lanes; k-tiled reduction over the lane axis.
    Lane-dense (tm, acc_lanes) f32 running max/sum; the cross-lane (XLU) reduce to (tm, 1)
    only happens in the k == last finalize block."""
    k = pl.program_id(1)

    @pl.when(k == 0)
    def _():
        mx_acc[...] = jnp.full_like(mx_acc, -jnp.inf)
        sum_acc[...] = jnp.zeros_like(sum_acc)

    need_mask = (s_total % ts) != 0          # static Python bool
    mx = mx_acc[...]
    sm = sum_acc[...]
    for j in range(ts // acc_lanes):         # static, unrolled loop over lane-aligned slabs
        xs = x_ref[:, j * acc_lanes:(j + 1) * acc_lanes].astype(jnp.float32)
        if need_mask:
            lane = (lax.broadcasted_iota(jnp.int32, xs.shape, 1)
                    + k * ts + j * acc_lanes)
            valid = lane < s_total
            mx = jnp.maximum(mx, jnp.where(valid, xs, -jnp.inf))
            sm = sm + jnp.where(valid, xs, 0.0)
        else:
            mx = jnp.maximum(mx, xs)
            sm = sm + xs
    mx_acc[...] = mx
    sum_acc[...] = sm

    @pl.when(k == pl.num_programs(1) - 1)
    def _():
        max_ref[...] = jnp.max(mx_acc[...], axis=-1, keepdims=True)
        avg_ref[...] = jnp.sum(sum_acc[...], axis=-1, keepdims=True) * inv_s


# ----------------------------- pass 2: tiny shared MLP + sigmoid -----------------------------

def _mlp_kernel(mx_ref, av_ref, w1_ref, w2_ref, o_ref):
    """sigmoid(relu(max@w1)@w2 + relu(avg@w1)@w2); the two fc2 matmuls are folded into one
    ((hm + ha) @ w2).  No biases (reference Linear layers use bias=False)."""
    w1 = w1_ref[...].astype(jnp.float32)
    hm = jnp.maximum(jnp.dot(mx_ref[...].astype(jnp.float32), w1,
                             preferred_element_type=jnp.float32), 0.0)
    ha = jnp.maximum(jnp.dot(av_ref[...].astype(jnp.float32), w1,
                             preferred_element_type=jnp.float32), 0.0)
    y = jnp.dot(hm + ha, w2_ref[...].astype(jnp.float32),
                preferred_element_type=jnp.float32)
    o_ref[...] = 1.0 / (1.0 + jnp.exp(-y))


# ----------------------------- pass 3: streaming broadcast rescale -----------------------------

def _scale_kernel(x_ref, s_ref, o_ref):
    """out[r, :] = x[r, :] * scale[r].  Multiply in the input dtype (no f32 upcast of the big
    block -> half the vreg pressure when the model runs in bf16)."""
    s = s_ref[...].astype(x_ref.dtype)
    o_ref[...] = (x_ref[...] * s).astype(o_ref.dtype)


# ----------------------------- tiling helpers -----------------------------

def _sublane_multiple(dtype):
    """Minimum sublane multiple for the dtype's packed (sub, 128) tile."""
    return {4: 8, 2: 16, 1: 32}.get(jnp.dtype(dtype).itemsize, 8)


def _row_tile(m, sub, cap=256):
    """Sublane (row) tile: multiple of `sub`, <= cap, aiming for >= 2 row blocks so the
    'parallel' grid axis can be megacore-sharded (v7x has 2 TensorCores)."""
    if m <= sub:
        return m                                     # tiny dim: single full block
    t = (min(cap, max(m // 2, sub)) // sub) * sub
    return max(t, sub)


def _spatial_tile(s, tm, itemsize, blk_cap_bytes, lane_cap=2048):
    """Lane (spatial) tile: full row when it fits the per-block byte budget, otherwise the
    largest multiple of 128 (<= lane_cap) that keeps one block under `blk_cap_bytes`."""
    if s <= 128 or tm * s * itemsize <= blk_cap_bytes:
        return s
    max_lanes = max(blk_cap_bytes // (tm * itemsize), 128)
    ts = (min(max_lanes, lane_cap, s) // 128) * 128
    return max(ts, 128)


# ----------------------------- forward -----------------------------

def channel_attention_forward(x_nchw, fc1_w, fc2_w):
    """x_nchw: (B, C, H, W). fc1_w: (C, C//r), fc2_w: (C//r, C) -- transposes of the PyTorch
    nn.Linear weights (Linear stores (out, in) and applies x @ W.T)."""
    b, c, h, w = x_nchw.shape
    m = b * c
    s = h * w
    x2d = x_nchw.reshape(m, s)                 # zero-copy view: rows = (b, c), lanes = spatial

    itemsize = jnp.dtype(x_nchw.dtype).itemsize
    sub = _sublane_multiple(x_nchw.dtype)
    tm = _row_tile(m, sub)

    # Per-block byte budgets chosen so that double-buffered streams fit the default scoped VMEM on
    # all generations (v5e 16 MiB is the binding one) and stay well inside v7x's 64 MiB VMEM:
    #   pass 1: one tiled input stream  -> 4 MiB blocks (2 bufs = 8 MiB + tiny accumulators)
    #   pass 3: two streams (x in, out) -> 2 MiB blocks (2 streams x 2 bufs = 8 MiB)
    ts1 = _spatial_tile(s, tm, itemsize, blk_cap_bytes=4 * 1024 * 1024)
    ts3 = _spatial_tile(s, tm, itemsize, blk_cap_bytes=2 * 1024 * 1024)

    acc_lanes = 128 if (ts1 >= 128 and ts1 % 128 == 0) else ts1

    grid1 = (pl.cdiv(m, tm), pl.cdiv(s, ts1))
    grid3 = (pl.cdiv(m, tm), pl.cdiv(s, ts3))

    # ---- pass 1: fused max + avg pooling (one read of the feature map) ----
    maxp, avgp = pl.pallas_call(
        functools.partial(_pool_kernel, 1.0 / float(s), s, ts1, acc_lanes),
        grid=grid1,
        in_specs=[pl.BlockSpec((tm, ts1), lambda i, k: (i, k))],
        out_specs=[pl.BlockSpec((tm, 1), lambda i, k: (i, 0)),
                   pl.BlockSpec((tm, 1), lambda i, k: (i, 0))],
        out_shape=[jax.ShapeDtypeStruct((m, 1), jnp.float32),
                   jax.ShapeDtypeStruct((m, 1), jnp.float32)],
        scratch_shapes=[pltpu.VMEM((tm, acc_lanes), jnp.float32),
                        pltpu.VMEM((tm, acc_lanes), jnp.float32)],
        compiler_params=pltpu.CompilerParams(
            dimension_semantics=("parallel", "arbitrary")),
    )(x2d)

    # ---- pass 2: tiny fused shared-MLP + sigmoid (single block; fc2 matmuls folded) ----
    scale = pl.pallas_call(
        _mlp_kernel,
        out_shape=jax.ShapeDtypeStruct((b, c), jnp.float32),
    )(maxp.reshape(b, c), avgp.reshape(b, c), fc1_w, fc2_w)

    # ---- pass 3: tiled broadcast rescale (one read + one write of the feature map) ----
    out2d = pl.pallas_call(
        _scale_kernel,
        grid=grid3,
        in_specs=[pl.BlockSpec((tm, ts3), lambda i, j: (i, j)),
                  pl.BlockSpec((tm, 1), lambda i, j: (i, 0))],
        out_specs=pl.BlockSpec((tm, ts3), lambda i, j: (i, j)),
        out_shape=jax.ShapeDtypeStruct((m, s), x_nchw.dtype),
        compiler_params=pltpu.CompilerParams(
            dimension_semantics=("parallel", "parallel")),
    )(x2d, scale.reshape(m, 1))

    return out2d.reshape(b, c, h, w)


# ----------------------------- pure-JAX reference -----------------------------

def channel_attention_ref(x, fc1_w, fc2_w):
    mx = jnp.max(x, axis=(2, 3))
    av = jnp.mean(x, axis=(2, 3))
    hm = jax.nn.relu(mx @ fc1_w)
    ha = jax.nn.relu(av @ fc1_w)
    sc = jax.nn.sigmoid(hm @ fc2_w + ha @ fc2_w)
    return x * sc[:, :, None, None]


def _run_case(key, b, c, h, w, ratio):
    kx, k1, k2 = jax.random.split(key, 3)
    x = jax.random.normal(kx, (b, c, h, w), jnp.float32)
    # PyTorch nn.Linear(C, C//ratio, bias=False).weight is (C//ratio, C); we store the transpose.
    fc1_w = jax.random.normal(k1, (c, c // ratio), jnp.float32) * (1.0 / math.sqrt(c))
    fc2_w = jax.random.normal(k2, (c // ratio, c), jnp.float32) * (1.0 / math.sqrt(c // ratio))

    out = jax.block_until_ready(channel_attention_forward(x, fc1_w, fc2_w))
    assert out.shape == (b, c, h, w), out.shape
    ref = channel_attention_ref(x, fc1_w, fc2_w)
    err = float(jnp.max(jnp.abs(out - ref)))
    assert err < 1e-4, f"max abs error vs reference: {err}"
    assert bool(jnp.all(jnp.isfinite(out)))


# ----------------------------- main -----------------------------

if __name__ == "__main__":
    key = jax.random.PRNGKey(0)
    k_a, k_b = jax.random.split(key)
    # main config
    _run_case(k_a, b=2, c=32, h=32, w=32, ratio=4)
    # awkward shape: B*C not divisible by the row tile -> exercises the cdiv-grid tail path
    _run_case(k_b, b=3, c=20, h=7, w=7, ratio=4)
    print("KERNEL_OK")
</pallas_src>

<mosaic_0001>
module attributes {stable_mosaic.version = 11 : i64} {
  func.func @_pool_kernel(%arg0: i32, %arg1: i32, %arg2: memref<32x1024xf32, #tpu.memory_space<vmem>>, %arg3: memref<32x1xf32, #tpu.memory_space<vmem>>, %arg4: memref<32x1xf32, #tpu.memory_space<vmem>>, %arg5: memref<32x128xf32, #tpu.memory_space<vmem>>, %arg6: memref<32x128xf32, #tpu.memory_space<vmem>>) attributes {dimension_semantics = [#tpu.dimension_semantics<parallel>, #tpu.dimension_semantics<arbitrary>], iteration_bounds = array<i64: 2, 1>, scalar_prefetch = 0 : i64, scratch_operands = 2 : i64, tpu.core_type = #tpu.core_type<tc>, window_params = [{transform_indices = @transform_0, window_bounds = array<i64: 32, 1024>}, {transform_indices = @transform_1, window_bounds = array<i64: 32, 1>}, {transform_indices = @transform_2, window_bounds = array<i64: 32, 1>}]} {
    %c0_i32 = arith.constant 0 : i32
    %0 = arith.cmpi eq, %arg1, %c0_i32 : i32
    %1 = arith.extui %0 : i1 to i32
    %c0_i32_0 = arith.constant 0 : i32
    %2 = arith.cmpi ne, %1, %c0_i32_0 : i32
    scf.if %2 {
      %cst = arith.constant 0xFF800000 : f32
      %34 = vector.broadcast %cst : f32 to vector<32x128xf32>
      %c0_19 = arith.constant 0 : index
      %c0_20 = arith.constant 0 : index
      %35 = vector.load %arg5[%c0_19, %c0_20] : memref<32x128xf32, #tpu.memory_space<vmem>>, vector<32x128xf32>
      tpu.vector_store %arg5[%c0_19, %c0_20], %34 {strides = array<i32>} : memref<32x128xf32, #tpu.memory_space<vmem>>, vector<32x128xf32>,
      %cst_21 = arith.constant 0.000000e+00 : f32
      %36 = vector.broadcast %cst_21 : f32 to vector<32x128xf32>
      %c0_22 = arith.constant 0 : index
      %c0_23 = arith.constant 0 : index
      %37 = vector.load %arg6[%c0_22, %c0_23] : memref<32x128xf32, #tpu.memory_space<vmem>>, vector<32x128xf32>
      tpu.vector_store %arg6[%c0_22, %c0_23], %36 {strides = array<i32>} : memref<32x128xf32, #tpu.memory_space<vmem>>, vector<32x128xf32>,
    } else {
    }
    %c0 = arith.constant 0 : index
    %c0_1 = arith.constant 0 : index
    %3 = vector.load %arg5[%c0, %c0_1] : memref<32x128xf32, #tpu.memory_space<vmem>>, vector<32x128xf32>
    %c0_2 = arith.constant 0 : index
    %c0_3 = arith.constant 0 : index
    %4 = vector.load %arg6[%c0_2, %c0_3] : memref<32x128xf32, #tpu.memory_space<vmem>>, vector<32x128xf32>
    %c0_4 = arith.constant 0 : index
    %c0_5 = arith.constant 0 : index
    %5 = vector.load %arg2[%c0_4, %c0_5] : memref<32x1024xf32, #tpu.memory_space<vmem>>, vector<32x128xf32>
    %6 = arith.maximumf %3, %5 : vector<32x128xf32>
    %7 = arith.addf %4, %5 : vector<32x128xf32>
    %c0_6 = arith.constant 0 : index
    %c128 = arith.constant 128 : index
    %8 = vector.load %arg2[%c0_6, %c128] : memref<32x1024xf32, #tpu.memory_space<vmem>>, vector<32x128xf32>
    %9 = arith.maximumf %6, %8 : vector<32x128xf32>
    %10 = arith.addf %7, %8 : vector<32x128xf32>
    %c0_7 = arith.constant 0 : index
    %c256 = arith.constant 256 : index
    %11 = vector.load %arg2[%c0_7, %c256] : memref<32x1024xf32, #tpu.memory_space<vmem>>, vector<32x128xf32>
    %12 = arith.maximumf %9, %11 : vector<32x128xf32>
    %13 = arith.addf %10, %11 : vector<32x128xf32>
    %c0_8 = arith.constant 0 : index
    %c384 = arith.constant 384 : index
    %14 = vector.load %arg2[%c0_8, %c384] : memref<32x1024xf32, #tpu.memory_space<vmem>>, vector<32x128xf32>
    %15 = arith.maximumf %12, %14 : vector<32x128xf32>
    %16 = arith.addf %13, %14 : vector<32x128xf32>
    %c0_9 = arith.constant 0 : index
    %c512 = arith.constant 512 : index
    %17 = vector.load %arg2[%c0_9, %c512] : memref<32x1024xf32, #tpu.memory_space<vmem>>, vector<32x128xf32>
    %18 = arith.maximumf %15, %17 : vector<32x128xf32>
    %19 = arith.addf %16, %17 : vector<32x128xf32>
    %c0_10 = arith.constant 0 : index
    %c640 = arith.constant 640 : index
    %20 = vector.load %arg2[%c0_10, %c640] : memref<32x1024xf32, #tpu.memory_space<vmem>>, vector<32x128xf32>
    %21 = arith.maximumf %18, %20 : vector<32x128xf32>
    %22 = arith.addf %19, %20 : vector<32x128xf32>
    %c0_11 = arith.constant 0 : index
    %c768 = arith.constant 768 : index
    %23 = vector.load %arg2[%c0_11, %c768] : memref<32x1024xf32, #tpu.memory_space<vmem>>, vector<32x128xf32>
    %24 = arith.maximumf %21, %23 : vector<32x128xf32>
    %25 = arith.addf %22, %23 : vector<32x128xf32>
    %c0_12 = arith.constant 0 : index
    %c896 = arith.constant 896 : index
    %26 = vector.load %arg2[%c0_12, %c896] : memref<32x1024xf32, #tpu.memory_space<vmem>>, vector<32x128xf32>
    %27 = arith.maximumf %24, %26 : vector<32x128xf32>
    %28 = arith.addf %25, %26 : vector<32x128xf32>
    %c0_13 = arith.constant 0 : index
    %c0_14 = arith.constant 0 : index
    %29 = vector.load %arg5[%c0_13, %c0_14] : memref<32x128xf32, #tpu.memory_space<vmem>>, vector<32x128xf32>
    tpu.vector_store %arg5[%c0_13, %c0_14], %27 {strides = array<i32>} : memref<32x128xf32, #tpu.memory_space<vmem>>, vector<32x128xf32>,
    %c0_15 = arith.constant 0 : index
    %c0_16 = arith.constant 0 : index
    %30 = vector.load %arg6[%c0_15, %c0_16] : memref<32x128xf32, #tpu.memory_space<vmem>>, vector<32x128xf32>
    tpu.vector_store %arg6[%c0_15, %c0_16], %28 {strides = array<i32>} : memref<32x128xf32, #tpu.memory_space<vmem>>, vector<32x128xf32>,
    %c0_i32_17 = arith.constant 0 : i32
    %31 = arith.cmpi eq, %arg1, %c0_i32_17 : i32
    %32 = arith.extui %31 : i1 to i32
    %c0_i32_18 = arith.constant 0 : i32
    %33 = arith.cmpi ne, %32, %c0_i32_18 : i32
    scf.if %33 {
      %c0_19 = arith.constant 0 : index
      %c0_20 = arith.constant 0 : index
      %34 = vector.load %arg5[%c0_19, %c0_20] : memref<32x128xf32, #tpu.memory_space<vmem>>, vector<32x128xf32>
      %cst = arith.constant dense<0xFF800000> : vector<32xf32>
      %35 = vector.multi_reduction <maximumf>, %34, %cst [1] : vector<32x128xf32> to vector<32xf32>
      %36 = vector.shape_cast %35 : vector<32xf32> to vector<32x1xf32>
      %c0_21 = arith.constant 0 : index
      %c0_22 = arith.constant 0 : index
      %37 = vector.load %arg3[%c0_21, %c0_22] : memref<32x1xf32, #tpu.memory_space<vmem>>, vector<32x1xf32>
      tpu.vector_store %arg3[%c0_21, %c0_22], %36 {strides = array<i32>} : memref<32x1xf32, #tpu.memory_space<vmem>>, vector<32x1xf32>,
      %c0_23 = arith.constant 0 : index
      %c0_24 = arith.constant 0 : index
      %38 = vector.load %arg6[%c0_23, %c0_24] : memref<32x128xf32, #tpu.memory_space<vmem>>, vector<32x128xf32>
      %cst_25 = arith.constant dense<0.000000e+00> : vector<32xf32>
      %39 = vector.multi_reduction <add>, %38, %cst_25 [1] : vector<32x128xf32> to vector<32xf32>
      %40 = vector.shape_cast %39 : vector<32xf32> to vector<32x1xf32>
      %cst_26 = arith.constant 9.765625E-4 : f32
      %41 = vector.broadcast %cst_26 : f32 to vector<32x1xf32>
      %42 = arith.mulf %40, %41 : vector<32x1xf32>
      %c0_27 = arith.constant 0 : index
      %c0_28 = arith.constant 0 : index
      %43 = vector.load %arg4[%c0_27, %c0_28] : memref<32x1xf32, #tpu.memory_space<vmem>>, vector<32x1xf32>
      tpu.vector_store %arg4[%c0_27, %c0_28], %42 {strides = array<i32>} : memref<32x1xf32, #tpu.memory_space<vmem>>, vector<32x1xf32>,
    } else {
    }
    return
  }
  func.func @transform_0(%arg0: i32, %arg1: i32) -> (i32, i32) {
    %c0_i32 = arith.constant 0 : i32
    return %arg0, %arg1 : i32, i32
  }
  func.func @transform_1(%arg0: i32, %arg1: i32) -> (i32, i32) {
    %c0_i32 = arith.constant 0 : i32
    %c0_i32_0 = arith.constant 0 : i32
    return %arg0, %c0_i32 : i32, i32
  }
  func.func @transform_2(%arg0: i32, %arg1: i32) -> (i32, i32) {
    %c0_i32 = arith.constant 0 : i32
    %c0_i32_0 = arith.constant 0 : i32
    return %arg0, %c0_i32 : i32, i32
  }
}

</mosaic_0001>

<bundles_post_ra>
// kernel: tpu_custom_call.1
= control target key start
LH: loop header
LB: loop body
LE: loop exit
PB: predicated region body
PF: predicated region fallthrough
CT: control target
= control target key end

     0   :  { %8 = vsyncpa [#allocation5], 0  ;;  %s788_s0 = inlined_call_operand.hbm [shape: f32[64,1024], index: 0, kind: input, shape index: {}]   ;;  %s789_s1 = inlined_call_operand.vmem [shape: f32[64,1], index: 1, kind: output, shape index: {0}]   ;;  %s790_s2 = inlined_call_operand.vmem [shape: f32[64,1], index: 2, kind: output, shape index: {1}]  }
   0x1   :  { %10 = vsyncpa [#allocation5 + $0x1], 0  ;;  %s648_s9 = smov 0   ;;  %s650_s10 = smov 0  }
   0x2   :  { %s652_s11 = smov 0   ;;  %s654_s12 = smov 0  }
   0x3   :  { %s656_s13 = smov 0   ;;  %s658_s14 = smov 0  }
   0x4 LB: > { %s475_s15 = sadd.s32 4294967295, %s628_s14   ;;  %s28_s16 = sadd.s32 1, %s624_s13  ;;  %s628_s14 = sphi %s658_s14, %s16_s14   ;;  %s624_s13 = sphi %s656_s13, %s798_s13   ;;  %s620_s12 = sphi %s654_s12, %s797_s12   ;;  %s616_s11 = sphi %s652_s11, %s796_s11   ;;  %s612_s10 = sphi %s650_s10, %s795_s10   ;;  %s608_s9 = sphi %s648_s9, %s794_s9  }
   0x5   : > { %p30_p0 = scmp.ge.s32.totalorder %s28_s16, 2  ;;  %s37_s17 = sadd.s32 1, %s616_s11 }
   0x6   : > { %p44_p1 = scmp.ne.s32.totalorder %s616_s11, %s612_s10  ;;  %p45_p2 = scmp.eq.s32.totalorder %s628_s14, 0 }
   0x7   : > { %s800_s16 = smov (%p30_p0, %s28_s16), 0  ;;  %p50_p4 = scmp.ne.s32.totalorder %s612_s10, %s608_s9 }
   0x8   : > { %p684_p3 = por %p45_p2, %p44_p1  ;;  %s32_s19 = ssub.s32 %s624_s13, %s800_s16 }
   0x9   : > { %p51_p5 = scmp.eq.s32.totalorder %s475_s15, 0  ;;  %p35_p6 = scmp.eq.s32.totalorder %s32_s19, 0 }
   0xa   : > { %p499_p8 = scmp.lt.s32.totalorder %s628_s14, 2  ;;  %s126_s22 = sand.u32 1, %s616_s11  }
   0xb   : > { %p691_p7 = por %p51_p5, %p50_p4  ;;  %s492_s23 = sshll.u32 %s624_s13, 12 }
   0xc   : > { %s697_s21 = scalar_select %p35_p6, %s616_s11, %s37_s17  }
   0xd   : > { %s479_s24 = sshll.u32 %s126_s22, 8  ;;  %s139_s27 = scalar_lea.hbm %s788_s0, %s492_s23 }
   0xe   : > { %s130_s28 = scalar_lea.vmem [#allocation4], %s479_s24  ;;  %p706_p9 = pnand %p499_p8, %p684_p3 }
   0xf   : > { %s140_s29 = sshll.u32 %s130_s28, 4  ;;  %s127_s3 = scalar_lea.sflag [#allocation5], %s126_s22  ;;  %s141_s29 = int_to_ptr.vmem [resolvable:$true] %s140_s29 }
  0x10   : > { %p552_p10 = pneg %p706_p9  ;;  %s563_s4 = scalar_lea.vmem %s141_s29, 4096 }
  0x11   : > { %p564_p11 = scmp.ne.s32.totalorder %s141_s29, %s563_s4  ;;  %s630_s5 = smov [#allocation4]  }
  0x12   : > { %s568_s6 = sshll.u32 %s630_s5, 4  ;;  %s569_s6 = int_to_ptr.vmem [resolvable:$false] %s568_s6 }
  0x13   : > { %p566_p12 = pnand %p564_p11, %p552_p10  ;;  %s570_s7 = scalar_lea.vmem %s569_s6, 8192 }
  0x14   : > { %p571_p0 = scmp.lt.s32.totalorder %s141_s29, %s569_s6  ;;  %p572_p1 = scmp.lt.s32.totalorder %s570_s7, %s563_s4 }
  0x15   : > { %p567_p13 = pneg %p566_p12 }
  0x16   : > { %p573_p2 = por %p572_p1, %p571_p0 }
  0x18   : > { %p574_p3 = pnand %p573_p2, %p567_p13 }
  0x1a   : > { %577 = shalt.err (!%p574_p3)
}
  0x1b   : > { %s631_s8 = smov 1024   ;;  %s632_s9 = smov 64  }
  0x1c   : > { %498 = dma.hbm_to_vmem [thread:$0]  (!%p706_p9), %s139_s27, 4096, %s141_s29, %s127_s3, %s631_s8, %s631_s8, %s632_s9  }
  0x1d   : > { %p483_p4 = scmp.ge.s32.totalorder %s628_s14, 1  ;;  %p148_p5 = scmp.lt.s32.totalorder %s628_s14, 3 }
  0x1f   : > { %p149_p6 = pnand %p483_p4, %p148_p5 }
  0x20   : > { %s154_s15 = sand.u32 (!%p149_p6), 1, %s612_s10  }
  0x21   : > { %152 = sbr.rel (%p149_p6) target bundleno = 205 (0xcd), region = 24  ;;  %s484_s17 = sshll.u32 (!%p149_p6), %s154_s15, 8 }
  0x22   : > { %s155_s18 = scalar_lea.sflag (!%p149_p6), [#allocation5], %s154_s15  ;;  %s717_s19 = scalar_lea.vmem (!%p149_p6), [#allocation4], %s484_s17 }
  0x26   : > { %603 = dma.done.wait (%p691_p7), %s155_s18, 4096  }
  0x27   : > { %605 = vsyncadd (%p691_p7), %s155_s18, 4294963200  ;;  %v218_v0 = vld [vmem:[%s717_s19] sm:$0xff]  ;;  %v230_v1 = vld [vmem:[%s717_s19 + $0x8] sm:$0xff]  ;;  %s485_s20 = sshll.u32 %s620_s12, 2  ;;  %vm337_vm0 = vcmask 7168  }
  0x28   : > { %v242_v2 = vld [vmem:[%s717_s19 + $0x10] sm:$0xff]  ;;  %v238_v3 = vadd.f32 %v230_v1, %v218_v0  ;;  %v234_v4 = vmax.f32 %v218_v0, %v230_v1  ;;  %v254_v5 = vld [vmem:[%s717_s19 + $0x18] sm:$0xff]  ;;  %v219_v6 = vld [vmem:[%s717_s19 + $0x40] sm:$0xff]  ;;  %p187_p7 = scmp.lt.s32.totalorder %s485_s20, 7 }
  0x29   : > { %v231_v9 = vld [vmem:[%s717_s19 + $0x48] sm:$0xff]  ;;  %v243_v10 = vld [vmem:[%s717_s19 + $0x50] sm:$0xff]  ;;  %v266_v11 = vld [vmem:[%s717_s19 + $0x20] sm:$0xff] }
  0x2a   : > { %v250_v7 = vadd.f32 %v242_v2, %v238_v3  ;;  %v246_v8 = vmax.f32 %v234_v4, %v242_v2  ;;  %v239_v12 = vadd.f32 %v231_v9, %v219_v6  ;;  %v235_v13 = vmax.f32 %v219_v6, %v231_v9  ;;  %v255_v16 = vld [vmem:[%s717_s19 + $0x58] sm:$0xff]  ;;  %v220_v17 = vld [vmem:[%s717_s19 + $0x80] sm:$0xff]  ;;  %v232_v18 = vld [vmem:[%s717_s19 + $0x88] sm:$0xff]  ;;  %s802_s20 = smov (!%p187_p7, %s485_s20), 7 }
  0x2b   : > { %v278_v19 = vld [vmem:[%s717_s19 + $0x28] sm:$0xff]  ;;  %v240_v21 = vadd.f32 %v232_v18, %v220_v17  ;;  %v244_v22 = vld [vmem:[%s717_s19 + $0x90] sm:$0xff]  ;;  %v236_v24 = vmax.f32 %v220_v17, %v232_v18  ;;  %v267_v28 = vld [vmem:[%s717_s19 + $0x60] sm:$0xff]  ;;  %s486_s22 = sshll.u32 %s802_s20, 3 }
  0x2c   : > { %v262_v14 = vadd.f32 %v254_v5, %v250_v7  ;;  %v258_v15 = vmax.f32 %v246_v8, %v254_v5  ;;  %v251_v20 = vadd.f32 %v243_v10, %v239_v12  ;;  %v247_v23 = vmax.f32 %v235_v13, %v243_v10  ;;  %v290_v26 = vld [vmem:[%s717_s19 + $0x30] sm:$0xff]  ;;  %v256_v29 = vld [vmem:[%s717_s19 + $0x98] sm:$0xff]  ;;  %v221_v33 = vld [vmem:[%s717_s19 + $0xc0] sm:$0xff]  ;;  %s190_s25 = scalar_lea.vmem %s789_s1, %s486_s22  ;;  %s196_s28 = scalar_lea.vmem %s790_s2, %s486_s22 }
  0x2d   : > { %v252_v31 = vadd.f32 %v244_v22, %v240_v21  ;;  %v233_v34 = vld [vmem:[%s717_s19 + $0xc8] sm:$0xff]  ;;  %v245_v35 = vld [vmem:[%s717_s19 + $0xd0] sm:$0xff]  ;;  %v248_v36 = vmax.f32 %v236_v24, %v244_v22  ;;  %v268_v40 = vld [vmem:[%s717_s19 + $0xa0] sm:$0xff] }
  0x2e   : > { %v274_v25 = vadd.f32 %v266_v11, %v262_v14  ;;  %v270_v27 = vmax.f32 %v258_v15, %v266_v11  ;;  %v263_v30 = vadd.f32 %v255_v16, %v251_v20  ;;  %v259_v32 = vmax.f32 %v247_v23, %v255_v16  ;;  %v279_v39 = vld [vmem:[%s717_s19 + $0x68] sm:$0xff]  ;;  %v302_v43 = vld [vmem:[%s717_s19 + $0x38] sm:$0xff]  ;;  %v291_v51 = vld [vmem:[%s717_s19 + $0x70] sm:$0xff] }
  0x2f   : > { %v241_v41 = vadd.f32 %v233_v34, %v221_v33  ;;  %v237_v42 = vmax.f32 %v221_v33, %v233_v34  ;;  %v264_v45 = vadd.f32 %v256_v29, %v252_v31  ;;  %v257_v47 = vld [vmem:[%s717_s19 + $0xd8] sm:$0xff]  ;;  %v260_v48 = vmax.f32 %v248_v36, %v256_v29  ;;  %v280_v52 = vld [vmem:[%s717_s19 + $0xa8] sm:$0xff]  ;;  %v269_v58 = vld [vmem:[%s717_s19 + $0xe0] sm:$0xff] }
  0x30   : > { %v286_v37 = vadd.f32 %v278_v19, %v274_v25  ;;  %v282_v38 = vmax.f32 %v270_v27, %v278_v19  ;;  %v275_v44 = vadd.f32 %v267_v28, %v263_v30  ;;  %v271_v46 = vmax.f32 %v259_v32, %v267_v28  ;;  %v303_v62 = vld [vmem:[%s717_s19 + $0x78] sm:$0xff]  ;;  %v292_v63 = vld [vmem:[%s717_s19 + $0xb0] sm:$0xff]  ;;  %v281_v5 = vld [vmem:[%s717_s19 + $0xe8] sm:$0xff] }
  0x31   : > { %v253_v53 = vadd.f32 %v245_v35, %v241_v41  ;;  %v249_v54 = vmax.f32 %v237_v42, %v245_v35  ;;  %v276_v56 = vadd.f32 %v268_v40, %v264_v45  ;;  %v272_v59 = vmax.f32 %v260_v48, %v268_v40  ;;  %v304_v6 = vld [vmem:[%s717_s19 + $0xb8] sm:$0xff]  ;;  %v293_v12 = vld [vmem:[%s717_s19 + $0xf0] sm:$0xff] }
  0x32   : > { %v298_v49 = vadd.f32 %v290_v26, %v286_v37  ;;  %v294_v50 = vmax.f32 %v282_v38, %v290_v26  ;;  %v287_v55 = vadd.f32 %v279_v39, %v275_v44  ;;  %v283_v57 = vmax.f32 %v271_v46, %v279_v39  ;;  %v305_v16 = vld [vmem:[%s717_s19 + $0xf8] sm:$0xff] }
  0x33   : > { %v265_v0 = vadd.f32 %v257_v47, %v253_v53  ;;  %v261_v1 = vmax.f32 %v249_v54, %v257_v47  ;;  %v288_v3 = vadd.f32 %v280_v52, %v276_v56  ;;  %v284_v8 = vmax.f32 %v272_v59, %v280_v52 }
  0x34   : > { %v310_v60 = vadd.f32 %v302_v43, %v298_v49  ;;  %v306_v61 = vmax.f32 %v294_v50, %v302_v43  ;;  %v299_v2 = vadd.f32 %v291_v51, %v287_v55  ;;  %v295_v4 = vmax.f32 %v283_v57, %v291_v51 }
  0x35   : > { %v277_v7 = vadd.f32 %v269_v58, %v265_v0  ;;  %v273_v9 = vmax.f32 %v261_v1, %v269_v58  ;;  %v300_v11 = vadd.f32 %v292_v63, %v288_v3  ;;  %v296_v19 = vmax.f32 %v284_v8, %v292_v63 }
  0x36   : > { %346 = vadd.xlane.f32.xlu0 %v310_v60  ;;  %329 = vmax.xlane.f32.xlu1 %v306_v61  ;;  %v311_v10 = vadd.f32 %v303_v62, %v299_v2  ;;  %v307_v17 = vmax.f32 %v295_v4, %v303_v62 }
  0x37   : > { %v289_v13 = vadd.f32 %v281_v5, %v277_v7  ;;  %v285_v14 = vmax.f32 %v273_v9, %v281_v5  ;;  %v312_v15 = vadd.f32 %v304_v6, %v300_v11  ;;  %v308_v22 = vmax.f32 %v296_v19, %v304_v6 }
  0x39   : > { %v301_v18 = vadd.f32 %v293_v12, %v289_v13  ;;  %v297_v20 = vmax.f32 %v285_v14, %v293_v12 }
  0x3a   : > { %348 = vadd.xlane.f32.xlu0 %v311_v10  ;;  %350 = vadd.xlane.f32.xlu1 %v312_v15 }
  0x3b   : > { %v313_v21 = vadd.f32 %v305_v16, %v301_v18  ;;  %v309_v23 = vmax.f32 %v297_v20, %v305_v16 }
  0x3e   : > { %331 = vmax.xlane.f32.xlu0 %v307_v17  ;;  %352 = vadd.xlane.f32.xlu1 %v313_v21 }
  0x42   : > { %333 = vmax.xlane.f32.xlu0 %v308_v22  ;;  %335 = vmax.xlane.f32.xlu1 %v309_v23 }
  0xbf   : > { %v347_v24 = vpop.xlane.xlu0 %346  ;;  %v330_v25 = vpop.xlane.xlu1 %329 }
  0xc0   : > { %v354_v26 = vmul.f32 0.0009765625, %v347_v24  ;;  %338 = vst.msk [vmem:[%s190_s25] sm:$0xff] %vm337_vm0, %v330_v25 }
  0xc2   : > { %358 = vst.msk [vmem:[%s196_s28] sm:$0xff] %vm337_vm0, %v354_v26 }
  0xc3   : > { %v349_v27 = vpop.xlane.xlu0 %348  ;;  %v351_v29 = vpop.xlane.xlu1 %350 }
  0xc4   : > { %v355_v28 = vmul.f32 0.0009765625, %v349_v27  ;;  %v356_v30 = vmul.f32 0.0009765625, %v351_v29 }
  0xc6   : > { %359 = vst.msk [vmem:[%s196_s28 + $0x8] sm:$0xff] %vm337_vm0, %v355_v28  ;;  %360 = vst.msk [vmem:[%s196_s28 + $0x10] sm:$0xff] %vm337_vm0, %v356_v30 }
  0xc7   : > { %v332_v31 = vpop.xlane.xlu0 %331  ;;  %v353_v32 = vpop.xlane.xlu1 %352 }
  0xc8   : > { %339 = vst.msk [vmem:[%s190_s25 + $0x8] sm:$0xff] %vm337_vm0, %v332_v31  ;;  %v357_v33 = vmul.f32 0.0009765625, %v353_v32 }
  0xca   : > { %361 = vst.msk [vmem:[%s196_s28 + $0x18] sm:$0xff] %vm337_vm0, %v357_v33 }
  0xcb   : > { %v334_v34 = vpop.xlane.xlu0 %333  ;;  %v336_v35 = vpop.xlane.xlu1 %335 }
  0xcc   : > { %340 = vst.msk [vmem:[%s190_s25 + $0x10] sm:$0xff] %vm337_vm0, %v334_v34  ;;  %341 = vst.msk [vmem:[%s190_s25 + $0x18] sm:$0xff] %vm337_vm0, %v336_v35 }
  0xcd PF: > { %s16_s14 = sadd.s32 1, %s628_s14   ;;  %s794_s9 = smov %s612_s10 }
  0xce   : > { %p13_p8 = scmp.ge.s32.totalorder %s16_s14, 4   ;;  %s795_s10 = smov %s616_s11 }
  0xcf   : > { %s796_s11 = smov %s697_s21  ;;  %s797_s12 = smov %s624_s13 }
  0xd0   : > { %s798_s13 = smov %s800_s16  ;;  %15 = sbr.rel (!%p13_p8) target bundleno = 4 (0x4), region = 84 }
  0xd5   :  { %401 = vsyncpa [#allocation5], 1 }
  0xd6   :  { %403 = vsyncpa [#allocation5 + $0x1], 1 }

</bundles_post_ra>
